<compile_context>
chip_gen: v7x
topology: tpu7x:2x2x1
jax: 0.10.0
libtpu: 0.0.40
codegen_flags: <defaults>
</compile_context>

<pallas_src>
import functools

import jax
import jax.numpy as jnp
from jax.experimental import pallas as pl
from jax.experimental.pallas import tpu as pltpu

NUM_TYPES = 119          # nn.Embedding(119, F)
NUM_TYPES_PAD = 128      # pad vocab to 128 (extra rows are zero, never selected)


def _round_up(x: int, m: int) -> int:
    return ((x + m - 1) // m) * m


def _embedding_kernel(idx_ref, table_ref, out_ref, *, pack, exact):
    # idx_ref:   (tile_rows, pack)       int32 -- atomic numbers, `pack` nodes / packed row
    # table_ref: (pack*128, pack*F)      f32   -- stacked, column-pre-shifted table (resident)
    # out_ref:   (tile_rows, pack*F)     f32   -- lane-dense packed output slab
    idx = idx_ref[...]
    tile_rows = idx.shape[0]

    # Hoisted once, reused for every pack slot.
    iota = jax.lax.broadcasted_iota(jnp.int32, (tile_rows, NUM_TYPES_PAD), 1)

    precision = jax.lax.Precision.HIGHEST if exact else None

    acc = None
    for j in range(pack):                                   # pack <= 8, statically unrolled
        # Fused cmp + select one-hot (0.0 / 1.0 f32), no separate astype pass.
        onehot = jnp.where(iota == idx[:, j:j + 1],
                           jnp.float32(1.0), jnp.float32(0.0))      # (tile_rows, 128)
        # Slot j's table slice already has its F real columns at j*F:(j+1)*F,
        # so the MXU result is lane-aligned; plain accumulation replaces the
        # old jnp.concatenate (no cross-lane relayout).
        tbl_j = table_ref[pl.ds(j * NUM_TYPES_PAD, NUM_TYPES_PAD), :]
        term = jnp.dot(onehot, tbl_j,
                       preferred_element_type=jnp.float32,
                       precision=precision)                 # (tile_rows, pack*F)
        acc = term if acc is None else acc + term

    out_ref[...] = acc.astype(out_ref.dtype)


def embedding_block_forward(atomic_numbers, emb_table, *,
                            tile_nodes=16384, max_pack=8,
                            out_dtype=jnp.float32, exact=False):
    """Pallas forward of Embedding_block (set_features=True).

    atomic_numbers: (N,) int32, values in [0, 119)
    emb_table:      (119, F) float32
    returns (node_attrs, node_features); node_features aliases node_attrs.
    """
    n = int(atomic_numbers.shape[0])
    f = int(emb_table.shape[1])

    # Lane-packing factor: pack several nodes into one 128-lane output row so the
    # output store is lane-dense whenever F < 128 and divides 128.
    if f < 128 and 128 % f == 0:
        pack = min(128 // f, max_pack)
    else:
        pack = 1
    width = pack * f

    n_rows = -(-n // pack)                                  # ceil(N / pack)

    # ---- tile size: big tiles to amortize the ~0.35 us/step overhead --------
    desired_rows = max(8, _round_up(max(tile_nodes // pack, 1), 8))
    if n_rows <= 8:
        tile_rows = n_rows                                  # single exact block for tiny inputs
    else:
        # Keep at least 2 grid steps when possible: v7x has 2 TensorCores and
        # a single-step grid would leave one idle.
        half_rows = max(8, _round_up(-(-n_rows // 2), 8))
        tile_rows = max(8, min(desired_rows, half_rows))

    # ---- stacked, column-pre-shifted table (built once, grid-invariant) -----
    # Row block j (rows j*128 .. j*128+118) holds the embedding table in columns
    # j*F:(j+1)*F; everything else is zero and never selected.
    emb = emb_table.astype(jnp.float32)
    table = jnp.zeros((pack * NUM_TYPES_PAD, width), jnp.float32)
    for j in range(pack):
        table = table.at[j * NUM_TYPES_PAD: j * NUM_TYPES_PAD + NUM_TYPES,
                         j * f:(j + 1) * f].set(emb)

    # ---- indices: row r holds nodes [pack*r, pack*r + pack) ------------------
    # Padding uses type 0 (a valid row); padded rows are sliced off at the end.
    idx = atomic_numbers.astype(jnp.int32)
    if n_rows * pack != n:
        idx = jnp.pad(idx, (0, n_rows * pack - n))
    idx2d = idx.reshape(n_rows, pack)

    grid = (pl.cdiv(n_rows, tile_rows),)

    kernel = functools.partial(_embedding_kernel, pack=pack, exact=exact)

    out2d = pl.pallas_call(
        kernel,
        out_shape=jax.ShapeDtypeStruct((n_rows, width), out_dtype),
        grid_spec=pltpu.PrefetchScalarGridSpec(
            num_scalar_prefetch=0,
            grid=grid,
            in_specs=[
                pl.BlockSpec((tile_rows, pack), lambda i: (i, 0)),              # node indices
                pl.BlockSpec((pack * NUM_TYPES_PAD, width), lambda i: (0, 0)),  # resident table
            ],
            out_specs=pl.BlockSpec((tile_rows, width), lambda i: (i, 0)),
        ),
        compiler_params=pltpu.CompilerParams(
            dimension_semantics=("parallel",),          # shardable across TCs (v7x)
            vmem_limit_bytes=32 * 1024 * 1024,          # room for the big tiles; safe on 64 MiB v7x
        ),
    )(idx2d, table)

    node_attrs = out2d.reshape(n_rows * pack, f)        # row-major identical -> free reshape
    if n_rows * pack != n:
        node_attrs = node_attrs[:n]
    # set_features=True: node_features is the same tensor (no second HBM write).
    return node_attrs, node_attrs


if __name__ == "__main__":
    key = jax.random.PRNGKey(0)
    k_tab, k_idx = jax.random.split(key)

    num_node_attr_feas = 32      # F
    num_nodes = 64               # N (small demo)

    # nn.Embedding default init is N(0, 1).
    emb_table = jax.random.normal(k_tab, (NUM_TYPES, num_node_attr_feas),
                                  dtype=jnp.float32)
    atomic_numbers = jax.random.randint(k_idx, (num_nodes,), 1, NUM_TYPES,
                                        dtype=jnp.int32)

    node_attrs, node_feats = embedding_block_forward(atomic_numbers, emb_table)
    jax.block_until_ready((node_attrs, node_feats))

    # Reference check (plain JAX gather).
    ref = emb_table[atomic_numbers]
    assert node_attrs.shape == (num_nodes, num_node_attr_feas)
    assert jnp.allclose(node_attrs, ref, atol=1e-5), "node_attrs mismatch"
    assert jnp.allclose(node_feats, ref, atol=1e-5), "node_features mismatch"

    print("KERNEL_OK")
</pallas_src>

<mosaic_0001>
module attributes {stable_mosaic.version = 11 : i64} {
  func.func @_embedding_kernel(%arg0: i32, %arg1: memref<8x4xi32, #tpu.memory_space<vmem>>, %arg2: memref<512x128xf32, #tpu.memory_space<vmem>>, %arg3: memref<8x128xf32, #tpu.memory_space<vmem>>) attributes {dimension_semantics = [#tpu.dimension_semantics<parallel>], iteration_bounds = array<i64: 2>, scalar_prefetch = 0 : i64, scratch_operands = 0 : i64, tpu.core_type = #tpu.core_type<tc>, window_params = [{transform_indices = @transform_0, window_bounds = array<i64: 8, 4>}, {pipeline_mode = #tpu.pipeline_mode<synchronous>, transform_indices = @transform_1, window_bounds = array<i64: 512, 128>}, {transform_indices = @transform_2, window_bounds = array<i64: 8, 128>}]} {
    %c0 = arith.constant 0 : index
    %c0_0 = arith.constant 0 : index
    %0 = vector.load %arg1[%c0, %c0_0] : memref<8x4xi32, #tpu.memory_space<vmem>>, vector<8x4xi32>
    %1 = tpu.iota {dimensions = array<i32: 1>} : vector<8x128xi32>
    %2 = vector.extract_strided_slice %0 {offsets = [0, 0], sizes = [8, 1], strides = [1, 1]} : vector<8x4xi32> to vector<8x1xi32>
    %3 = vector.broadcast %2 : vector<8x1xi32> to vector<8x128xi32>
    %4 = arith.cmpi eq, %1, %3 : vector<8x128xi32>
    %cst = arith.constant 1.000000e+00 : f32
    %cst_1 = arith.constant 0.000000e+00 : f32
    %5 = vector.broadcast %cst : f32 to vector<8x128xf32>
    %6 = vector.broadcast %cst_1 : f32 to vector<8x128xf32>
    %7 = arith.select %4, %5, %6 : vector<8x128xi1>, vector<8x128xf32>
    %c0_2 = arith.constant 0 : index
    %c0_3 = arith.constant 0 : index
    %8 = vector.load %arg2[%c0_2, %c0_3] : memref<512x128xf32, #tpu.memory_space<vmem>>, vector<128x128xf32>
    %cst_4 = arith.constant dense<0.000000e+00> : vector<8x128xf32>
    %9 = tpu.matmul %7, %8, %cst_4 {dimension_numbers = #tpu.dot_dimension_numbers<[1], [0], [0], [1], [0, 0, 1, 1], [], []>} : vector<8x128xf32>, vector<128x128xf32>, vector<8x128xf32> -> vector<8x128xf32>
    %10 = vector.extract_strided_slice %0 {offsets = [0, 1], sizes = [8, 1], strides = [1, 1]} : vector<8x4xi32> to vector<8x1xi32>
    %11 = vector.broadcast %10 : vector<8x1xi32> to vector<8x128xi32>
    %12 = arith.cmpi eq, %1, %11 : vector<8x128xi32>
    %cst_5 = arith.constant 1.000000e+00 : f32
    %cst_6 = arith.constant 0.000000e+00 : f32
    %13 = vector.broadcast %cst_5 : f32 to vector<8x128xf32>
    %14 = vector.broadcast %cst_6 : f32 to vector<8x128xf32>
    %15 = arith.select %12, %13, %14 : vector<8x128xi1>, vector<8x128xf32>
    %c128 = arith.constant 128 : index
    %c0_7 = arith.constant 0 : index
    %16 = vector.load %arg2[%c128, %c0_7] : memref<512x128xf32, #tpu.memory_space<vmem>>, vector<128x128xf32>
    %cst_8 = arith.constant dense<0.000000e+00> : vector<8x128xf32>
    %17 = tpu.matmul %15, %16, %cst_8 {dimension_numbers = #tpu.dot_dimension_numbers<[1], [0], [0], [1], [0, 0, 1, 1], [], []>} : vector<8x128xf32>, vector<128x128xf32>, vector<8x128xf32> -> vector<8x128xf32>
    %18 = arith.addf %9, %17 : vector<8x128xf32>
    %19 = vector.extract_strided_slice %0 {offsets = [0, 2], sizes = [8, 1], strides = [1, 1]} : vector<8x4xi32> to vector<8x1xi32>
    %20 = vector.broadcast %19 : vector<8x1xi32> to vector<8x128xi32>
    %21 = arith.cmpi eq, %1, %20 : vector<8x128xi32>
    %cst_9 = arith.constant 1.000000e+00 : f32
    %cst_10 = arith.constant 0.000000e+00 : f32
    %22 = vector.broadcast %cst_9 : f32 to vector<8x128xf32>
    %23 = vector.broadcast %cst_10 : f32 to vector<8x128xf32>
    %24 = arith.select %21, %22, %23 : vector<8x128xi1>, vector<8x128xf32>
    %c256 = arith.constant 256 : index
    %c0_11 = arith.constant 0 : index
    %25 = vector.load %arg2[%c256, %c0_11] : memref<512x128xf32, #tpu.memory_space<vmem>>, vector<128x128xf32>
    %cst_12 = arith.constant dense<0.000000e+00> : vector<8x128xf32>
    %26 = tpu.matmul %24, %25, %cst_12 {dimension_numbers = #tpu.dot_dimension_numbers<[1], [0], [0], [1], [0, 0, 1, 1], [], []>} : vector<8x128xf32>, vector<128x128xf32>, vector<8x128xf32> -> vector<8x128xf32>
    %27 = arith.addf %18, %26 : vector<8x128xf32>
    %28 = vector.extract_strided_slice %0 {offsets = [0, 3], sizes = [8, 1], strides = [1, 1]} : vector<8x4xi32> to vector<8x1xi32>
    %29 = vector.broadcast %28 : vector<8x1xi32> to vector<8x128xi32>
    %30 = arith.cmpi eq, %1, %29 : vector<8x128xi32>
    %cst_13 = arith.constant 1.000000e+00 : f32
    %cst_14 = arith.constant 0.000000e+00 : f32
    %31 = vector.broadcast %cst_13 : f32 to vector<8x128xf32>
    %32 = vector.broadcast %cst_14 : f32 to vector<8x128xf32>
    %33 = arith.select %30, %31, %32 : vector<8x128xi1>, vector<8x128xf32>
    %c384 = arith.constant 384 : index
    %c0_15 = arith.constant 0 : index
    %34 = vector.load %arg2[%c384, %c0_15] : memref<512x128xf32, #tpu.memory_space<vmem>>, vector<128x128xf32>
    %cst_16 = arith.constant dense<0.000000e+00> : vector<8x128xf32>
    %35 = tpu.matmul %33, %34, %cst_16 {dimension_numbers = #tpu.dot_dimension_numbers<[1], [0], [0], [1], [0, 0, 1, 1], [], []>} : vector<8x128xf32>, vector<128x128xf32>, vector<8x128xf32> -> vector<8x128xf32>
    %36 = arith.addf %27, %35 : vector<8x128xf32>
    %c0_17 = arith.constant 0 : index
    %c0_18 = arith.constant 0 : index
    %37 = vector.load %arg3[%c0_17, %c0_18] : memref<8x128xf32, #tpu.memory_space<vmem>>, vector<8x128xf32>
    tpu.vector_store %arg3[%c0_17, %c0_18], %36 {strides = array<i32>} : memref<8x128xf32, #tpu.memory_space<vmem>>, vector<8x128xf32>,
    return
  }
  func.func @transform_0(%arg0: i32) -> (i32, i32) {
    %c0_i32 = arith.constant 0 : i32
    %c0_i32_0 = arith.constant 0 : i32
    return %arg0, %c0_i32 : i32, i32
  }
  func.func @transform_1(%arg0: i32) -> (i32, i32) {
    %c0_i32 = arith.constant 0 : i32
    %c0_i32_0 = arith.constant 0 : i32
    %c0_i32_1 = arith.constant 0 : i32
    return %c0_i32, %c0_i32_0 : i32, i32
  }
  func.func @transform_2(%arg0: i32) -> (i32, i32) {
    %c0_i32 = arith.constant 0 : i32
    %c0_i32_0 = arith.constant 0 : i32
    return %arg0, %c0_i32 : i32, i32
  }
}

</mosaic_0001>

<bundles_post_ra>
// kernel: tpu_custom_call.1
= control target key start
LH: loop header
LB: loop body
LE: loop exit
PB: predicated region body
PF: predicated region fallthrough
CT: control target
= control target key end

     0   :  { %7 = vsyncpa [#allocation3], 0  ;;  %s1307_s0 = inlined_call_operand.vmem [shape: s32[16,4], index: 0, kind: input, shape index: {}]   ;;  %s1308_s1 = inlined_call_operand.hbm [shape: f32[512,128], index: 1, kind: input, shape index: {}]   ;;  %s1309_s2 = inlined_call_operand.hbm [shape: f32[16,128], index: 2, kind: output, shape index: {}]  }
   0x1   :  { %8 = vsyncpa [#allocation4], 0 }
   0x2   :  { %10 = vsyncpa [#allocation4 + $0x1], 0  ;;  %s1122_s9 = smov 0   ;;  %s1124_s10 = smov 0  }
   0x3   :  { %s1126_s11 = smov 0   ;;  %s1128_s12 = smov 0  }
   0x4 LB: > { %s1143_s13 = sadd.s32 4294967295, %s1093_s12   ;;  %s609_s14 = sadd.s32 4294967294, %s1093_s12   ;;  %s1093_s12 = sphi %s1128_s12, %s1325_s12   ;;  %s1089_s11 = sphi %s1126_s11, %s1324_s11   ;;  %s1085_s10 = sphi %s1124_s10, %s1323_s10   ;;  %s1081_s9 = sphi %s1122_s9, %s1322_s9  }
   0x5   : > { %s1147_s15 = sadd.s32 1, %s1093_s12   ;;  %s70_s16 = sadd.s32 1, %s1089_s11 }
   0x6   : > { %s67_s17 = ssub.s32 %s1093_s12, %s1147_s15  ;;  %p80_p0 = scmp.ne.s32.totalorder %s1089_s11, %s1085_s10 }
   0x7   : > { %p68_p1 = scmp.eq.s32.totalorder %s67_s17, 0  ;;  %p81_p2 = scmp.eq.s32.totalorder %s1143_s13, 1 }
   0x8   : > { %p86_p3 = scmp.ne.s32.totalorder %s1085_s10, %s1081_s9  ;;  %p87_p4 = scmp.eq.s32.totalorder %s609_s14, 1 }
   0x9   : > { %s1158_s18 = scalar_select %p68_p1, %s1089_s11, %s70_s16  }
   0xa   : > { %p1160_p5 = por %p81_p2, %p80_p0  ;;  %p1164_p6 = por %p87_p4, %p86_p3 }
   0xb   : > { %p610_p7 = scmp.ge.s32.totalorder %s1093_s12, 1  ;;  %p94_p8 = scmp.lt.s32.totalorder %s1093_s12, 3 }
   0xc   : > { %s1313_s19 = scalar_select %p1160_p5, 1, 0 }
   0xd   : > { %s1314_s20 = scalar_select %p1164_p6, 1, 0 }
   0xe   : > { %p1310_p9 = scmp.eq.s32.totalorder %s1143_s13, 0  ;;  %p1171_p10 = pnand %p610_p7, %p94_p8 }
   0xf   : > { %s1095_s22 = smov [#allocation2]   ;;  %s999_s27 = scalar_lea.hbm %s1308_s1, 8192 }
  0x10   : > { %s1315_s21 = scalar_select %p1171_p10, 1, 0 }
  0x11   : > { %s106_s23 = sshll.u32 %s1095_s22, 4  ;;  %p940_p11 = pneg %p1171_p10  ;;  %s107_s23 = int_to_ptr.vmem [resolvable:$true] %s106_s23 }
  0x12   : > { %p1000_p13 = scmp.ne.s32.totalorder %s1308_s1, %s999_s27  ;;  %p1006_p3 = scmp.lt.u32.totalorder %s999_s27, %s1308_s1 }
  0x13   : > { %p1179_p12 = pnand %p1310_p9, %p940_p11 }
  0x15   : > { %p1001_p0 = pneg %p1179_p12 }
  0x17   : > { %p1002_p1 = pnand %p1001_p0, %p1000_p13 }
  0x19   : > { %p1003_p2 = pneg %p1002_p1 }
  0x1b   : > { %p1008_p4 = pnand %p1006_p3, %p1003_p2 }
  0x1d   : > { %1011 = shalt.err (!%p1008_p4)
}
  0x1e   : > { %s1012_s4 = scalar_lea.vmem %s107_s23, 8192  ;;  %p1020_p9 = scmp.lt.s32.totalorder %s107_s23, %s107_s23 }
  0x1f   : > { %p1013_p7 = scmp.ne.s32.totalorder %s107_s23, %s1012_s4  ;;  %p1021_p6 = scmp.lt.s32.totalorder %s1012_s4, %s1012_s4 }
  0x21   : > { %p1015_p8 = pnand %p1013_p7, %p1001_p0  ;;  %p1022_p5 = por %p1021_p6, %p1020_p9 }
  0x23   : > { %p1016_p11 = pneg %p1015_p8 }
  0x25   : > { %p1023_p10 = pnand %p1022_p5, %p1016_p11 }
  0x27   : > { %1026 = shalt.err (!%p1023_p10)
}
  0x28   : > { %s1096_s5 = smov 128   ;;  %s1097_s6 = smov 8  }
  0x29   : > { %943 = dma.hbm_to_vmem [thread:$0]  (!%p1179_p12), %s1308_s1, 8192, %s107_s23, [#allocation3], %s1096_s5, %s1096_s5, %s1097_s6  }
  0x2a   : > { %p1317_p13 = scmp.ne.s32.totalorder %s1315_s21, 0 }
  0x2b   : > { %p1318_p1 = scmp.eq.s32.totalorder (!%p1317_p13), %s1143_s13, 0 }
  0x2c   : > { %129 = sbr.rel (%p1317_p13) target bundleno = 453 (0x1c5), region = 28 }
  0x33   : > { %1072 = dma.done.wait (%p1318_p1), [#allocation3], 8192   ;;  %p1319_p0 = pmov %p1318_p1 }
  0x34   : > { %p150_p5 = scmp.lt.s32.totalorder %s1143_s13, 1  ;;  %v1098_v0 = vmov 1   ;;  %v1099_v1 = vmov 0   ;;  %v1100_v2 = vmov 0.0|0.0   ;;  %v183_v4 = vld [vmem:[#allocation2 + $0x80] sm:$0xff]  ;;  %v184_v5 = vld [vmem:[#allocation2 + $0x88] sm:$0xff]  ;;  %v155_v55 = vlaneseq }
  0x35   : > { %1074 = vsyncadd (%p1319_p0), [#allocation3], 4294959104  ;;  %994 = vset.pattern.permute.xlu0 %v1098_v0  ;;  %996 = vset.pattern.permute.xlu1 %v1099_v1  ;;  %v834_v6 = vpack.c.bf16 %v184_v5, %v183_v4  ;;  %v185_v7 = vld [vmem:[#allocation2 + $0x90] sm:$0xff]  ;;  %v186_v8 = vld [vmem:[#allocation2 + $0x98] sm:$0xff]  ;;  %vm1101_vm0 = vmmov 0   ;;  %v1102_v11 = vmov 0.0  }
  0x36   : > { %s151_s14 = scalar_select %p150_p5, %s1143_s13, 1  ;;  %833 = vmatprep.subr.bf16.mxu1 %v1100_v2  ;;  %881 = vmatprep.subr.bf16.mxu0 %v1100_v2  ;;  %v344_v9 = vld [vmem:[#allocation2 + $0x100] sm:$0xff]  ;;  %v345_v10 = vld [vmem:[#allocation2 + $0x108] sm:$0xff]  ;;  %v837_v12 = vpack.c.bf16 %v186_v8, %v185_v7  ;;  %v346_v16 = vld [vmem:[#allocation2 + $0x110] sm:$0xff]  ;;  %v1103_v18 = vmov 2   ;;  %v1104_v19 = vmov 3  }
  0x37   : > { %725 = vmatprep.mubr.msk.f32.mxu1 %vm1101_vm0, %v1102_v11  ;;  %795 = vmatprep.mubr.msk.f32.mxu0 %vm1101_vm0, %v1102_v11  ;;  %v882_v13 = vpack.c.bf16 %v345_v10, %v344_v9  ;;  %v187_v14 = vld [vmem:[#allocation2 + $0xa0] sm:$0xff]  ;;  %v188_v15 = vld [vmem:[#allocation2 + $0xa8] sm:$0xff]  ;;  %v347_v17 = vld [vmem:[#allocation2 + $0x118] sm:$0xff]  ;;  %v1232_v58 = vand.u32 127, %v155_v55  ;;  %v1105_v1 = vmov 1.0   ;;  %s147_s23 = sand.u32 1, %s1085_s10  }
  0x38   : > { %s616_s16 = sshll.u32 %s151_s14, 3  ;;  %835 = vmatpush3.bf16.msra.mxu1 %v834_v6  ;;  %v840_v20 = vpack.c.bf16 %v188_v15, %v187_v14  ;;  %v885_v21 = vpack.c.bf16 %v347_v17, %v346_v16  ;;  %v189_v22 = vld [vmem:[#allocation2 + $0xb0] sm:$0xff]  ;;  %v190_v23 = vld [vmem:[#allocation2 + $0xb8] sm:$0xff]  ;;  %v348_v24 = vld [vmem:[#allocation2 + $0x120] sm:$0xff]  ;;  %s615_s24 = sshll.u32 %s147_s23, 3 }
  0x39   : > { %s153_s22 = scalar_lea.vmem %s1307_s0, %s616_s16  ;;  %836 = vmatprep.subr.bf16.mxu1 %v1100_v2  ;;  %883 = vmatpush3.bf16.msra.mxu0 %v882_v13  ;;  %v349_v25 = vld [vmem:[#allocation2 + $0x128] sm:$0xff]  ;;  %v843_v26 = vpack.c.bf16 %v190_v23, %v189_v22  ;;  %v191_v28 = vld [vmem:[#allocation2 + $0xc0] sm:$0xff]  ;;  %v350_v30 = vld [vmem:[#allocation2 + $0x130] sm:$0xff]  ;;  %s622_s25 = sshll.u32 %s1143_s13, 7 }
  0x3a   : > { %v154_v3 = vld [vmem:[%s153_s22] sm:$0xff]  ;;  %884 = vmatprep.subr.bf16.mxu0 %v1100_v2  ;;  %v888_v27 = vpack.c.bf16 %v349_v25, %v348_v24  ;;  %v192_v29 = vld [vmem:[#allocation2 + $0xc8] sm:$0xff]  ;;  %v351_v31 = vld [vmem:[#allocation2 + $0x138] sm:$0xff]  ;;  %s149_s26 = scalar_lea.vmem [#allocation5], %s615_s24  ;;  %s1265_s30 = scalar_lea.hbm %s1309_s2, %s622_s25 }
  0x3b   : > { %179 = vperm.xlu0 %994, %v154_v3   ;;  %158 = vperm.xlu1 %996, %v154_v3   ;;  %v846_v32 = vpack.c.bf16 %v192_v29, %v191_v28  ;;  %v891_v33 = vpack.c.bf16 %v351_v31, %v350_v30  ;;  %v193_v34 = vld [vmem:[#allocation2 + $0xd0] sm:$0xff]  ;;  %v194_v35 = vld [vmem:[#allocation2 + $0xd8] sm:$0xff]  ;;  %v352_v36 = vld [vmem:[#allocation2 + $0x140] sm:$0xff]  ;;  %s538_s27 = sshll.u32 %s149_s26, 4  ;;  %s525_s3 = scalar_lea.sflag [#allocation4], %s147_s23  ;;  %s1267_s27 = int_to_ptr.vmem [resolvable:$true] %s538_s27 }
  0x3c   : > { %838 = vmatpush3.bf16.msra.mxu1 %v837_v12  ;;  %v353_v37 = vld [vmem:[#allocation2 + $0x148] sm:$0xff]  ;;  %v849_v38 = vpack.c.bf16 %v194_v35, %v193_v34  ;;  %v195_v40 = vld [vmem:[#allocation2 + $0xe0] sm:$0xff]  ;;  %v354_v42 = vld [vmem:[#allocation2 + $0x150] sm:$0xff]  ;;  %s1027_s4 = scalar_lea.vmem %s1267_s27, 128  ;;  %p1320_p9 = scmp.ne.s32.totalorder %s1313_s19, 0 }
  0x3d   : > { %839 = vmatprep.subr.bf16.mxu1 %v1100_v2  ;;  %886 = vmatpush3.bf16.msra.mxu0 %v885_v21  ;;  %v894_v39 = vpack.c.bf16 %v353_v37, %v352_v36  ;;  %v196_v41 = vld [vmem:[#allocation2 + $0xe8] sm:$0xff]  ;;  %v355_v43 = vld [vmem:[#allocation2 + $0x158] sm:$0xff]  ;;  %v197_v46 = vld [vmem:[#allocation2 + $0xf0] sm:$0xff]  ;;  %p1028_p6 = scmp.ne.s32.totalorder %s1267_s27, %s1027_s4  ;;  %s1106_s13 = smov [#allocation5]  }
  0x3e   : > { %887 = vmatprep.subr.bf16.mxu0 %v1100_v2  ;;  %v852_v44 = vpack.c.bf16 %v196_v41, %v195_v40  ;;  %v897_v45 = vpack.c.bf16 %v355_v43, %v354_v42  ;;  %v198_v47 = vld [vmem:[#allocation2 + $0xf8] sm:$0xff]  ;;  %v356_v48 = vld [vmem:[#allocation2 + $0x160] sm:$0xff]  ;;  %v357_v49 = vld [vmem:[#allocation2 + $0x168] sm:$0xff]  ;;  %s1031_s5 = sshll.u32 %s1106_s13, 4  ;;  %s1032_s5 = int_to_ptr.vmem [resolvable:$false] %s1031_s5 }
  0x3f   : > { %995 = vset.pattern.permute.xlu0 %v1103_v18  ;;  %997 = vset.pattern.permute.xlu1 %v1104_v19  ;;  %v855_v50 = vpack.c.bf16 %v198_v47, %v197_v46  ;;  %v900_v51 = vpack.c.bf16 %v357_v49, %v356_v48  ;;  %v358_v52 = vld [vmem:[#allocation2 + $0x170] sm:$0xff]  ;;  %v359_v53 = vld [vmem:[#allocation2 + $0x178] sm:$0xff]  ;;  %v162_v56 = vld [vmem:[#allocation2] sm:$0xff]  ;;  %p1029_p10 = pnand %p1028_p6, %p1320_p9  ;;  %s1033_s6 = scalar_lea.vmem %s1032_s5, 256 }
  0x40   : > { %340 = vperm.xlu0 %995, %v154_v3   ;;  %432 = vperm.xlu1 %997, %v154_v3   ;;  %v903_v54 = vpack.c.bf16 %v359_v53, %v358_v52  ;;  %v163_v57 = vld [vmem:[#allocation2 + $0x8] sm:$0xff]  ;;  %v164_v61 = vld [vmem:[#allocation2 + $0x10] sm:$0xff]  ;;  %v165_v62 = vld [vmem:[#allocation2 + $0x18] sm:$0xff]  ;;  %p1034_p2 = scmp.lt.s32.totalorder %s1267_s27, %s1032_s5  ;;  %p1035_p3 = scmp.lt.s32.totalorder %s1033_s6, %s1027_s4 }
  0x41   : > { %841 = vmatpush3.bf16.msra.mxu1 %v840_v20  ;;  %889 = vmatpush3.bf16.msra.mxu0 %v888_v27  ;;  %v858_v59 = vpack.c.bf16 %v163_v57, %v162_v56  ;;  %v436_v63 = vld [vmem:[#allocation2 + $0x180] sm:$0xff]  ;;  %v437_v0 = vld [vmem:[#allocation2 + $0x188] sm:$0xff]  ;;  %v861_v3 = vpack.c.bf16 %v165_v62, %v164_v61  ;;  %v438_v8 = vld [vmem:[#allocation2 + $0x190] sm:$0xff]  ;;  %p1030_p12 = pneg %p1029_p10 }
  0x42   : > { %842 = vmatprep.subr.bf16.mxu1 %v1100_v2  ;;  %890 = vmatprep.subr.bf16.mxu0 %v1100_v2  ;;  %v906_v4 = vpack.c.bf16 %v437_v0, %v436_v63  ;;  %v166_v5 = vld [vmem:[#allocation2 + $0x20] sm:$0xff]  ;;  %v167_v6 = vld [vmem:[#allocation2 + $0x28] sm:$0xff]  ;;  %v439_v9 = vld [vmem:[#allocation2 + $0x198] sm:$0xff]  ;;  %p1036_p4 = por %p1035_p3, %p1034_p2 }
  0x43   : > { %v864_v10 = vpack.c.bf16 %v167_v6, %v166_v5  ;;  %v909_v12 = vpack.c.bf16 %v439_v9, %v438_v8  ;;  %v168_v13 = vld [vmem:[#allocation2 + $0x30] sm:$0xff]  ;;  %v169_v14 = vld [vmem:[#allocation2 + $0x38] sm:$0xff]  ;;  %v440_v15 = vld [vmem:[#allocation2 + $0x1a0] sm:$0xff] }
  0x44   : > { %998 = vset.pattern.permute.xlu0 %v1104_v19  ;;  %v441_v16 = vld [vmem:[#allocation2 + $0x1a8] sm:$0xff]  ;;  %v867_v17 = vpack.c.bf16 %v169_v14, %v168_v13  ;;  %v170_v19 = vld [vmem:[#allocation2 + $0x40] sm:$0xff]  ;;  %v442_v21 = vld [vmem:[#allocation2 + $0x1b0] sm:$0xff]  ;;  %p1037_p7 = pnand %p1036_p4, %p1030_p12 }
  0x45   : > { %844 = vmatpush3.bf16.msra.mxu1 %v843_v26  ;;  %892 = vmatpush3.bf16.msra.mxu0 %v891_v33  ;;  %v912_v18 = vpack.c.bf16 %v441_v16, %v440_v15  ;;  %v171_v20 = vld [vmem:[#allocation2 + $0x48] sm:$0xff]  ;;  %v443_v22 = vld [vmem:[#allocation2 + $0x1b8] sm:$0xff]  ;;  %v172_v25 = vld [vmem:[#allocation2 + $0x50] sm:$0xff] }
  0x46   : > { %845 = vmatprep.subr.bf16.mxu1 %v1100_v2  ;;  %893 = vmatprep.subr.bf16.mxu0 %v1100_v2  ;;  %v870_v23 = vpack.c.bf16 %v171_v20, %v170_v19  ;;  %v915_v24 = vpack.c.bf16 %v443_v22, %v442_v21  ;;  %v444_v26 = vld [vmem:[#allocation2 + $0x1c0] sm:$0xff]  ;;  %v445_v27 = vld [vmem:[#allocation2 + $0x1c8] sm:$0xff]  ;;  %v447_v33 = vld [vmem:[#allocation2 + $0x1d8] sm:$0xff] }
  0x47   : > { %v918_v29 = vpack.c.bf16 %v445_v27, %v444_v26  ;;  %v174_v30 = vld [vmem:[#allocation2 + $0x60] sm:$0xff]  ;;  %v175_v31 = vld [vmem:[#allocation2 + $0x68] sm:$0xff]  ;;  %v176_v36 = vld [vmem:[#allocation2 + $0x70] sm:$0xff] }
  0x48   : > { %v876_v34 = vpack.c.bf16 %v175_v31, %v174_v30  ;;  %v177_v37 = vld [vmem:[#allocation2 + $0x78] sm:$0xff]  ;;  %v450_v43 = vld [vmem:[#allocation2 + $0x1f0] sm:$0xff] }
  0x49   : > { %847 = vmatpush3.bf16.msra.mxu1 %v846_v32  ;;  %895 = vmatpush3.bf16.msra.mxu0 %v894_v39  ;;  %v446_v32 = vld [vmem:[#allocation2 + $0x1d0] sm:$0xff]  ;;  %v449_v39 = vld [vmem:[#allocation2 + $0x1e8] sm:$0xff]  ;;  %v879_v40 = vpack.c.bf16 %v177_v37, %v176_v36 }
  0x4a   : > { %848 = vmatprep.subr.bf16.mxu1 %v1100_v2  ;;  %896 = vmatprep.subr.bf16.mxu0 %v1100_v2  ;;  %v921_v35 = vpack.c.bf16 %v447_v33, %v446_v32 }
  0x4d   : > { %850 = vmatpush3.bf16.msra.mxu1 %v849_v38  ;;  %898 = vmatpush3.bf16.msra.mxu0 %v897_v45  ;;  %v448_v38 = vld [vmem:[#allocation2 + $0x1e0] sm:$0xff] }
  0x4e   : > { %851 = vmatprep.subr.bf16.mxu1 %v1100_v2  ;;  %899 = vmatprep.subr.bf16.mxu0 %v1100_v2  ;;  %v924_v42 = vpack.c.bf16 %v449_v39, %v448_v38 }
  0x51   : > { %853 = vmatpush3.bf16.msra.mxu1 %v852_v44  ;;  %901 = vmatpush3.bf16.msra.mxu0 %v900_v51  ;;  %v451_v44 = vld [vmem:[#allocation2 + $0x1f8] sm:$0xff] }
  0x52   : > { %854 = vmatprep.subr.bf16.mxu1 %v1100_v2  ;;  %902 = vmatprep.subr.bf16.mxu0 %v1100_v2  ;;  %v927_v45 = vpack.c.bf16 %v451_v44, %v450_v43 }
  0x55   : > { %856 = vmatpush3.bf16.msra.mxu1 %v855_v50  ;;  %904 = vmatpush3.bf16.msra.mxu0 %v903_v54 }
  0x56   : > { %857 = vmatprep.subr.bf16.mxu1 %v1100_v2  ;;  %905 = vmatprep.subr.bf16.mxu0 %v1100_v2 }
  0xba   : > { %v180_v60 = vpop.permute.xlu0 %179  ;;  %v159_v41 = vpop.permute.xlu1 %158 }
  0xbb   : > { %vm181_vm1 = vcmp.eq.s32.totalorder %v1232_v58, %v180_v60  ;;  %vm160_vm3 = vcmp.eq.s32.totalorder %v1232_v58, %v159_v41 }
  0xbc   : > { %726 = vmatmul.mubr.msk.f32.vlgmr.msra.gmra.mrb[0].mxu1 %vm181_vm1, %v1105_v1 }
  0xbd   : > { %859 = vmatpush3.bf16.msra.mxu1 %v858_v59  ;;  %760 = vmatprep.mubr.msk.f32.mxu1 %vm1101_vm0, %v1102_v11 }
  0xbe   : > { %860 = vmatprep.subr.bf16.mxu1 %v1100_v2 }
  0xbf   : > { %v341_v7 = vpop.permute.xlu0 %340  ;;  %v433_v46 = vpop.permute.xlu1 %432 }
  0xc0   : > { %vm342_vm2 = vcmp.eq.s32.totalorder %v1232_v58, %v341_v7  ;;  %vm434_vm4 = vcmp.eq.s32.totalorder %v1232_v58, %v433_v46 }
  0xc1   : > { %862 = vmatpush3.bf16.msra.mxu1 %v861_v3  ;;  %796 = vmatmul.mubr.msk.f32.vlgmr.msra.gmra.mrb[0].mxu0 %vm342_vm2, %v1105_v1 }
  0xc2   : > { %907 = vmatpush3.bf16.msra.mxu0 %v906_v4  ;;  %863 = vmatprep.subr.bf16.mxu1 %v1100_v2 }
  0xc3   : > { %908 = vmatprep.subr.bf16.mxu0 %v1100_v2  ;;  %830 = vmatprep.mubr.msk.f32.mxu0 %vm1101_vm0, %v1102_v11  ;;  %v173_v11 = vld [vmem:[#allocation2 + $0x58] sm:$0xff] }
  0xc4   : > { %v873_v28 = vpack.c.bf16 %v173_v11, %v172_v25 }
  0xc5   : > { %865 = vmatpush3.bf16.msra.mxu1 %v864_v10 }
  0xc6   : > { %910 = vmatpush3.bf16.msra.mxu0 %v909_v12  ;;  %866 = vmatprep.subr.bf16.mxu1 %v1100_v2 }
  0xc7   : > { %911 = vmatprep.subr.bf16.mxu0 %v1100_v2 }
  0xc9   : > { %868 = vmatpush3.bf16.msra.mxu1 %v867_v17 }
  0xca   : > { %913 = vmatpush3.bf16.msra.mxu0 %v912_v18  ;;  %869 = vmatprep.subr.bf16.mxu1 %v1100_v2 }
  0xcb   : > { %914 = vmatprep.subr.bf16.mxu0 %v1100_v2 }
  0xcd   : > { %871 = vmatpush3.bf16.msra.mxu1 %v870_v23 }
  0xce   : > { %916 = vmatpush3.bf16.msra.mxu0 %v915_v24  ;;  %872 = vmatprep.subr.bf16.mxu1 %v1100_v2 }
  0xcf   : > { %917 = vmatprep.subr.bf16.mxu0 %v1100_v2 }
  0xd1   : > { %874 = vmatpush3.bf16.msra.mxu1 %v873_v28 }
  0xd2   : > { %919 = vmatpush3.bf16.msra.mxu0 %v918_v29  ;;  %875 = vmatprep.subr.bf16.mxu1 %v1100_v2 }
  0xd3   : > { %920 = vmatprep.subr.bf16.mxu0 %v1100_v2 }
  0xd5   : > { %877 = vmatpush3.bf16.msra.mxu1 %v876_v34 }
  0xd6   : > { %922 = vmatpush3.bf16.msra.mxu0 %v921_v35  ;;  %878 = vmatprep.subr.bf16.mxu1 %v1100_v2 }
  0xd7   : > { %923 = vmatprep.subr.bf16.mxu0 %v1100_v2 }
  0xd9   : > { %880 = vmatpush3.bf16.msra.mxu1 %v879_v40 }
  0xda   : > { %925 = vmatpush3.bf16.msra.mxu0 %v924_v42 }
  0xdb   : > { %926 = vmatprep.subr.bf16.mxu0 %v1100_v2 }
  0xdc   : > { %761 = vmatmul.mubr.msk.f32.vlgmr.msra.gmra.mrb[0].mxu1 %vm160_vm3, %v1105_v1 }
  0xde   : > { %928 = vmatpush3.bf16.msra.mxu0 %v927_v45 }
  0xe1   : > { %831 = vmatmul.mubr.msk.f32.vlgmr.msra.gmra.mrb[0].mxu0 %vm434_vm4, %v1105_v1 }
 0x1af   : > { %v335_v47 = vpop.f32.mrb[0].mxu1 }
 0x1b0   : > { %v762_v48 = vpop.f32.mrb[1].mxu1 }
 0x1b4   : > { %v518_v49 = vpop.f32.mrb[0].mxu0 }
 0x1b5   : > { %v929_v50 = vadd.f32 %v518_v49, %v335_v47  ;;  %v832_v51 = vpop.f32.mrb[1].mxu0 }
 0x1b7   : > { %523 = vst [vmem:[%s149_s26] sm:$0xff] %v929_v50 }
 0x1b8   : > { %1040 = shalt.err (!%p1037_p7)
}
 0x1b9   : > { %s1041_s7 = scalar_lea.hbm %s1265_s30, 128  ;;  %s1045_s16 = scalar_lea.hbm %s1309_s2, 256 }
 0x1ba   : > { %p1042_p8 = scmp.ne.s32.totalorder %s1265_s30, %s1041_s7  ;;  %p1046_p1 = scmp.lt.u32.totalorder %s1265_s30, %s1309_s2 }
 0x1bb   : > { %p1047_p0 = scmp.lt.u32.totalorder %s1045_s16, %s1041_s7  ;;  %p1049_p6 = scmp.lt.u32.totalorder %s1041_s7, %s1265_s30 }
 0x1bc   : > { %p1043_p11 = pnand %p1042_p8, %p1320_p9 }
 0x1bd   : > { %p1048_p5 = por %p1047_p0, %p1046_p1 }
 0x1be   : > { %p1044_p13 = pneg %p1043_p11 }
 0x1bf   : > { %p1050_p10 = por %p1049_p6, %p1048_p5 }
 0x1c1   : > { %p1051_p12 = pnand %p1050_p10, %p1044_p13 }
 0x1c3   : > { %1054 = shalt.err (!%p1051_p12)
}
 0x1c4   : > { %938 = dma.vmem_to_hbm [thread:$0]  (%p1320_p9), %s1267_s27, 128, %s1265_s30, %s525_s3  }
 0x1c5 PF: > { %p950_p2 = scmp.ge.s32.totalorder %s1093_s12, 2  ;;  %s550_s22 = sand.u32 1, %s1081_s9  }
 0x1c6   : > { %p1321_p3 = scmp.ne.s32.totalorder %s1314_s20, 0  ;;  %s551_s23 = scalar_lea.sflag [#allocation4], %s550_s22 }
 0x1c8   : > { %p945_p4 = pnand %p950_p2, %p1321_p3 }
 0x1ca   : > { %1076 = dma.done.wait (!%p945_p4), %s551_s23, 128  }
 0x1cb   : > { %1078 = vsyncadd (!%p945_p4), %s551_s23, 4294967168  ;;  %p13_p7 = scmp.ge.s32.totalorder %s1147_s15, 4   ;;  %s1322_s9 = smov %s1085_s10 }
 0x1cc   : > { %s1323_s10 = smov %s1089_s11  ;;  %s1324_s11 = smov %s1158_s18 }
 0x1cd   : > { %s1325_s12 = smov %s1147_s15  ;;  %15 = sbr.rel (!%p13_p7) target bundleno = 4 (0x4), region = 68 }
 0x1d4   :  { %556 = vsyncpa [#allocation3], 1 }
 0x1d5   :  { %558 = vsyncpa [#allocation3 + $0x1], 1 }
 0x1d6   :  { %559 = vsyncpa [#allocation4], 1 }
 0x1d7   :  { %561 = vsyncpa [#allocation4 + $0x1], 1 }

</bundles_post_ra>
